<compile_context>
chip_gen: v5e
topology: v5e:2x2
jax: 0.10.0
libtpu: 0.0.40
codegen_flags: <defaults>
</compile_context>

<pallas_src>
import functools

import jax
import jax.numpy as jnp
from jax import lax
from jax.experimental import pallas as pl
from jax.experimental.pallas import tpu as pltpu


def _cox_loss_kernel(st_i_ref, th_i_ref, cen_i_ref, st_j_ref, et_j_ref,
                     out_ref, acc_ref, *, n_chunks):
    # i on sublanes: (ti, 1) blocks.  j on lanes: swept in (1, TJL) chunks of
    # the VMEM-resident full-length arrays.
    acc_ref[...] = jnp.zeros_like(acc_ref)
    # Hoist the lane-broadcast of survtime[i] out of the j loop
    # (JAX does not CSE broadcast_in_dim inside loops).
    st_i = jnp.broadcast_to(st_i_ref[...], acc_ref.shape)          # (ti, TJL)

    def chunk_step(c):
        st_j = st_j_ref[pl.ds(c, 1), :]                             # (1, TJL)
        et_j = et_j_ref[pl.ds(c, 1), :]                             # (1, TJL)
        # contrib[i, j] = exp(theta[j]) if survtime[j] >= survtime[i] else 0
        # Padded j already has exp(theta) == 0, so no mask is needed here.
        acc_ref[...] += jnp.where(st_j >= st_i, et_j, 0.0)

    if n_chunks <= 16:
        # Fully unrolled for typical sizes (gives the LLO scheduler a flat
        # basic block of compare+select+add).
        for c in range(n_chunks):
            chunk_step(c)
    else:
        def body(c, carry):
            chunk_step(c)
            return carry
        lax.fori_loop(0, n_chunks, body, 0)

    # One cross-lane reduction per i-tile (XLU), then the cheap EUP epilogue.
    risk = jnp.sum(acc_ref[...], axis=1, keepdims=True)             # (ti, 1)
    out_ref[...] = (th_i_ref[...] - jnp.log(risk)) * cen_i_ref[...]


def _pick_tile(total, candidates):
    for c in candidates:
        if c <= total and total % c == 0:
            return c
    return total


def cox_loss_v2(y_true, hazard_pred):
    """y_true: (B, 2) [survtime, censor]; hazard_pred: (B, 1) or (B,). Returns scalar loss."""
    B = y_true.shape[0]
    survtime = y_true[:, 0].astype(jnp.float32)
    censor = (y_true[:, 1] != 0).astype(jnp.float32)        # matches torch .bool()
    theta = hazard_pred.reshape(-1).astype(jnp.float32)     # .squeeze().reshape(-1)
    exp_theta = jnp.exp(theta)                               # hoisted out of the kernel

    # Pad the batch to a multiple of 128 lanes.  Zero-padded exp(theta) makes
    # padded j inert; padded i lanes are sliced off before the final mean.
    Bp = max(128, ((B + 127) // 128) * 128)
    pad = Bp - B
    st_p = jnp.pad(survtime, (0, pad))
    th_p = jnp.pad(theta, (0, pad))
    cen_p = jnp.pad(censor, (0, pad))
    et_p = jnp.pad(exp_theta, (0, pad))

    # i tile (sublanes): capped at 1024 so per-step VMEM stays well under the
    # v5e 16 MiB default and Bp>=2048 yields >=2 i-tiles (both v7x TCs busy).
    ti = _pick_tile(Bp, (1024, 512, 256, 128))
    # j chunk width (lanes) for the in-kernel sweep.
    tjl = _pick_tile(Bp, (256, 128))
    n_chunks = Bp // tjl
    grid = (Bp // ti,)

    kernel = functools.partial(_cox_loss_kernel, n_chunks=n_chunks)

    terms = pl.pallas_call(
        kernel,
        out_shape=jax.ShapeDtypeStruct((Bp, 1), jnp.float32),
        grid=grid,
        in_specs=[
            pl.BlockSpec((ti, 1), lambda g: (g, 0)),              # survtime[i]
            pl.BlockSpec((ti, 1), lambda g: (g, 0)),              # theta[i]
            pl.BlockSpec((ti, 1), lambda g: (g, 0)),              # censor[i]
            pl.BlockSpec((n_chunks, tjl), lambda g: (0, 0)),      # survtime[j], lane-dense, resident
            pl.BlockSpec((n_chunks, tjl), lambda g: (0, 0)),      # exp(theta)[j], lane-dense, resident
        ],
        out_specs=pl.BlockSpec((ti, 1), lambda g: (g, 0)),
        scratch_shapes=[pltpu.VMEM((ti, tjl), jnp.float32)],
        compiler_params=pltpu.CompilerParams(
            dimension_semantics=("parallel",)),
    )(
        st_p.reshape(Bp, 1),
        th_p.reshape(Bp, 1),
        cen_p.reshape(Bp, 1),
        st_p.reshape(n_chunks, tjl),
        et_p.reshape(n_chunks, tjl),
    )
    # -mean over the real batch (censored samples contribute 0, like torch.mean).
    return -jnp.sum(terms[:B, 0]) / B


def _reference(y_true, hazard_pred):
    survtime = y_true[:, 0].astype(jnp.float32)
    censor = (y_true[:, 1] != 0).astype(jnp.float32)
    theta = hazard_pred.reshape(-1).astype(jnp.float32)
    R = (survtime[None, :] >= survtime[:, None]).astype(jnp.float32)
    risk = jnp.sum(jnp.exp(theta)[None, :] * R, axis=1)
    return -jnp.mean((theta - jnp.log(risk)) * censor)


if __name__ == "__main__":
    key = jax.random.PRNGKey(0)
    k1, k2, k3 = jax.random.split(key, 3)

    B = 8
    survtime = jax.random.uniform(k1, (B,), minval=0.1, maxval=10.0)
    censor = jax.random.bernoulli(k2, 0.6, (B,)).astype(jnp.float32)
    y_true = jnp.stack([survtime, censor], axis=1)                  # (B, 2)
    hazard_pred = jax.random.normal(k3, (B, 1), dtype=jnp.float32)  # (B, 1)

    loss = jax.block_until_ready(cox_loss_v2(y_true, hazard_pred))

    ref = _reference(y_true, hazard_pred)
    assert jnp.allclose(loss, ref, rtol=1e-5, atol=1e-5), (loss, ref)

    print("KERNEL_OK")
</pallas_src>

<mosaic_0001>
module attributes {stable_mosaic.version = 11 : i64} {
  func.func @_cox_loss_kernel(%arg0: i32, %arg1: memref<128x1xf32, #tpu.memory_space<vmem>>, %arg2: memref<128x1xf32, #tpu.memory_space<vmem>>, %arg3: memref<128x1xf32, #tpu.memory_space<vmem>>, %arg4: memref<1x128xf32, #tpu.memory_space<vmem>>, %arg5: memref<1x128xf32, #tpu.memory_space<vmem>>, %arg6: memref<128x1xf32, #tpu.memory_space<vmem>>, %arg7: memref<128x128xf32, #tpu.memory_space<vmem>>) attributes {dimension_semantics = [#tpu.dimension_semantics<parallel>], iteration_bounds = array<i64: 1>, scalar_prefetch = 0 : i64, scratch_operands = 1 : i64, tpu.core_type = #tpu.core_type<tc>, window_params = [{transform_indices = @transform_0, window_bounds = array<i64: 128, 1>}, {transform_indices = @transform_1, window_bounds = array<i64: 128, 1>}, {transform_indices = @transform_2, window_bounds = array<i64: 128, 1>}, {pipeline_mode = #tpu.pipeline_mode<synchronous>, transform_indices = @transform_3, window_bounds = array<i64: 1, 128>}, {pipeline_mode = #tpu.pipeline_mode<synchronous>, transform_indices = @transform_4, window_bounds = array<i64: 1, 128>}, {transform_indices = @transform_5, window_bounds = array<i64: 128, 1>}]} {
    %cst = arith.constant 0.000000e+00 : f32
    %0 = vector.broadcast %cst : f32 to vector<128x128xf32>
    %c0 = arith.constant 0 : index
    %c0_0 = arith.constant 0 : index
    %1 = vector.load %arg7[%c0, %c0_0] : memref<128x128xf32, #tpu.memory_space<vmem>>, vector<128x128xf32>
    tpu.vector_store %arg7[%c0, %c0_0], %0 {strides = array<i32>} : memref<128x128xf32, #tpu.memory_space<vmem>>, vector<128x128xf32>,
    %c0_1 = arith.constant 0 : index
    %c0_2 = arith.constant 0 : index
    %2 = vector.load %arg1[%c0_1, %c0_2] : memref<128x1xf32, #tpu.memory_space<vmem>>, vector<128x1xf32>
    %3 = vector.shape_cast %2 : vector<128x1xf32> to vector<128x1xf32>
    %4 = vector.broadcast %3 : vector<128x1xf32> to vector<128x128xf32>
    %c0_3 = arith.constant 0 : index
    %c0_4 = arith.constant 0 : index
    %5 = vector.load %arg4[%c0_3, %c0_4] : memref<1x128xf32, #tpu.memory_space<vmem>>, vector<1x128xf32>
    %c0_5 = arith.constant 0 : index
    %c0_6 = arith.constant 0 : index
    %6 = vector.load %arg5[%c0_5, %c0_6] : memref<1x128xf32, #tpu.memory_space<vmem>>, vector<1x128xf32>
    %c0_7 = arith.constant 0 : index
    %c0_8 = arith.constant 0 : index
    %7 = vector.load %arg7[%c0_7, %c0_8] : memref<128x128xf32, #tpu.memory_space<vmem>>, vector<128x128xf32>
    %8 = vector.broadcast %5 : vector<1x128xf32> to vector<128x128xf32>
    %9 = arith.cmpf oge, %8, %4 : vector<128x128xf32>
    %cst_9 = arith.constant 0.000000e+00 : f32
    %10 = vector.shape_cast %6 : vector<1x128xf32> to vector<1x128xf32>
    %11 = vector.broadcast %10 : vector<1x128xf32> to vector<128x128xf32>
    %12 = vector.broadcast %cst_9 : f32 to vector<128x128xf32>
    %13 = arith.select %9, %11, %12 : vector<128x128xi1>, vector<128x128xf32>
    %14 = arith.addf %7, %13 : vector<128x128xf32>
    %c0_10 = arith.constant 0 : index
    %c0_11 = arith.constant 0 : index
    %15 = vector.load %arg7[%c0_10, %c0_11] : memref<128x128xf32, #tpu.memory_space<vmem>>, vector<128x128xf32>
    tpu.vector_store %arg7[%c0_10, %c0_11], %14 {strides = array<i32>} : memref<128x128xf32, #tpu.memory_space<vmem>>, vector<128x128xf32>,
    %c0_12 = arith.constant 0 : index
    %c0_13 = arith.constant 0 : index
    %16 = vector.load %arg7[%c0_12, %c0_13] : memref<128x128xf32, #tpu.memory_space<vmem>>, vector<128x128xf32>
    %cst_14 = arith.constant dense<0.000000e+00> : vector<128xf32>
    %17 = vector.multi_reduction <add>, %16, %cst_14 [1] : vector<128x128xf32> to vector<128xf32>
    %18 = vector.shape_cast %17 : vector<128xf32> to vector<128x1xf32>
    %c0_15 = arith.constant 0 : index
    %c0_16 = arith.constant 0 : index
    %19 = vector.load %arg2[%c0_15, %c0_16] : memref<128x1xf32, #tpu.memory_space<vmem>>, vector<128x1xf32>
    %20 = math.log %18 : vector<128x1xf32>
    %21 = arith.subf %19, %20 : vector<128x1xf32>
    %c0_17 = arith.constant 0 : index
    %c0_18 = arith.constant 0 : index
    %22 = vector.load %arg3[%c0_17, %c0_18] : memref<128x1xf32, #tpu.memory_space<vmem>>, vector<128x1xf32>
    %23 = arith.mulf %21, %22 : vector<128x1xf32>
    %c0_19 = arith.constant 0 : index
    %c0_20 = arith.constant 0 : index
    %24 = vector.load %arg6[%c0_19, %c0_20] : memref<128x1xf32, #tpu.memory_space<vmem>>, vector<128x1xf32>
    tpu.vector_store %arg6[%c0_19, %c0_20], %23 {strides = array<i32>} : memref<128x1xf32, #tpu.memory_space<vmem>>, vector<128x1xf32>,
    return
  }
  func.func @transform_0(%arg0: i32) -> (i32, i32) {
    %c0_i32 = arith.constant 0 : i32
    %c0_i32_0 = arith.constant 0 : i32
    return %arg0, %c0_i32 : i32, i32
  }
  func.func @transform_1(%arg0: i32) -> (i32, i32) {
    %c0_i32 = arith.constant 0 : i32
    %c0_i32_0 = arith.constant 0 : i32
    return %arg0, %c0_i32 : i32, i32
  }
  func.func @transform_2(%arg0: i32) -> (i32, i32) {
    %c0_i32 = arith.constant 0 : i32
    %c0_i32_0 = arith.constant 0 : i32
    return %arg0, %c0_i32 : i32, i32
  }
  func.func @transform_3(%arg0: i32) -> (i32, i32) {
    %c0_i32 = arith.constant 0 : i32
    %c0_i32_0 = arith.constant 0 : i32
    %c0_i32_1 = arith.constant 0 : i32
    return %c0_i32, %c0_i32_0 : i32, i32
  }
  func.func @transform_4(%arg0: i32) -> (i32, i32) {
    %c0_i32 = arith.constant 0 : i32
    %c0_i32_0 = arith.constant 0 : i32
    %c0_i32_1 = arith.constant 0 : i32
    return %c0_i32, %c0_i32_0 : i32, i32
  }
  func.func @transform_5(%arg0: i32) -> (i32, i32) {
    %c0_i32 = arith.constant 0 : i32
    %c0_i32_0 = arith.constant 0 : i32
    return %arg0, %c0_i32 : i32, i32
  }
}

</mosaic_0001>

<bundles_post_ra>
// kernel: tpu_custom_call.1
= control target key start
LH: loop header
LB: loop body
LE: loop exit
PB: predicated region body
PF: predicated region fallthrough
CT: control target
= control target key end

     0   :  { %v423_v0 = vmov 0   ;;  %s704_s0 = inlined_call_operand.vmem [shape: f32[128,1], index: 0, kind: input, shape index: {}]   ;;  %s705_s3 = inlined_call_operand.vmem [shape: f32[1,128], index: 3, kind: input, shape index: {}]   ;;  %s706_s4 = inlined_call_operand.vmem [shape: f32[1,128], index: 4, kind: input, shape index: {}]   ;;  %s707_s1 = inlined_call_operand.vmem [shape: f32[128,1], index: 1, kind: input, shape index: {}]   ;;  %s708_s2 = inlined_call_operand.vmem [shape: f32[128,1], index: 2, kind: input, shape index: {}]   ;;  %s709_s5 = inlined_call_operand.vmem [shape: f32[128,1], index: 5, kind: output, shape index: {}]  }
   0x1   :  { %387 = vset.pattern.permute.xlu1 %v423_v0  ;;  %386 = vset.pattern.permute.xlu0 %v423_v0  ;;  %v38_v1 = vld [vmem:[%s704_s0 + $0x10] sm:$0xff]  ;;  %v36_v2 = vld [vmem:[%s704_s0] sm:$0xff]  ;;  %v39_v4 = vld [vmem:[%s704_s0 + $0x18] sm:$0xff] }
   0x2   :  { %v40_v3 = vld [vmem:[%s704_s0 + $0x20] sm:$0xff]  ;;  %64 = vperm.xlu1 %387, %v38_v1   ;;  %54 = vperm.xlu0 %386, %v36_v2   ;;  %v37_v5 = vld [vmem:[%s704_s0 + $0x8] sm:$0xff]  ;;  %v43_v7 = vld [vmem:[%s704_s0 + $0x38] sm:$0xff] }
   0x3   :  { %388 = vset.pattern.permute.xlu2 %v423_v0  ;;  %v41_v6 = vld [vmem:[%s704_s0 + $0x28] sm:$0xff]  ;;  %v42_v8 = vld [vmem:[%s704_s0 + $0x30] sm:$0xff]  ;;  %v44_v9 = vld [vmem:[%s704_s0 + $0x40] sm:$0xff] }
   0x4   :  { %74 = vperm.xlu2 %388, %v40_v3   ;;  %v46_v10 = vld [vmem:[%s704_s0 + $0x50] sm:$0xff]  ;;  %v45_v11 = vld [vmem:[%s704_s0 + $0x48] sm:$0xff]  ;;  %v47_v12 = vld [vmem:[%s704_s0 + $0x58] sm:$0xff] }
   0x5   :  { %v49_v13 = vld [vmem:[%s704_s0 + $0x68] sm:$0xff]  ;;  %v48_v14 = vld [vmem:[%s704_s0 + $0x60] sm:$0xff]  ;;  %v50_v15 = vld [vmem:[%s704_s0 + $0x70] sm:$0xff] }
   0x6   :  { %v51_v16 = vld [vmem:[%s704_s0 + $0x78] sm:$0xff]  ;;  %v505_v17 = vld [vmem:[%s705_s3] ss:$0 sm:$0xff]  ;;  %v270_v59 = vld [vmem:[%s707_s1 + $0x10] sm:$0xff] }
   0x7   :  { %v510_v18 = vld [vmem:[%s706_s4] ss:$0 sm:$0xff]  ;;  %v334_v63 = vld [vmem:[%s708_s2 + $0x10] sm:$0xff] }
   0x8   :  { %v268_v54 = vld [vmem:[%s707_s1] sm:$0xff] }
   0x9   :  { %v332_v60 = vld [vmem:[%s708_s2] sm:$0xff] }
   0xa   :  { %69 = vperm.xlu1 %387, %v39_v4   ;;  %59 = vperm.xlu0 %386, %v37_v5   ;;  %v272_v4 = vld [vmem:[%s707_s1 + $0x20] sm:$0xff] }
   0xc   :  { %79 = vperm.xlu2 %388, %v41_v6  }
  0x12   :  { %89 = vperm.xlu1 %387, %v43_v7   ;;  %84 = vperm.xlu0 %386, %v42_v8   ;;  %v269_v7 = vld [vmem:[%s707_s1 + $0x8] sm:$0xff] }
  0x14   :  { %94 = vperm.xlu2 %388, %v44_v9  }
  0x1a   :  { %104 = vperm.xlu1 %387, %v46_v10   ;;  %99 = vperm.xlu0 %386, %v45_v11   ;;  %v336_v10 = vld [vmem:[%s708_s2 + $0x20] sm:$0xff] }
  0x1c   :  { %109 = vperm.xlu2 %388, %v47_v12  }
  0x22   :  { %119 = vperm.xlu1 %387, %v49_v13   ;;  %114 = vperm.xlu0 %386, %v48_v14   ;;  %v333_v14 = vld [vmem:[%s708_s2 + $0x8] sm:$0xff] }
  0x24   :  { %124 = vperm.xlu2 %388, %v50_v15  }
  0x2a   :  { %129 = vperm.xlu0 %386, %v51_v16  }
  0x5e   :  { %v75_v23 = vpop.permute.xlu2 %74 }
  0x5f   :  { %vm157_vm2 = vcmp.ge.f32.partialorder %v505_v17, %v75_v23 }
  0x60   :  { %v176_v26 = vsel %vm157_vm2, %v510_v18, 0.0 }
  0x66   :  { %v80_v28 = vpop.permute.xlu2 %79 }
  0x67   :  { %vm158_vm7 = vcmp.ge.f32.partialorder %v505_v17, %v80_v28  ;;  %v274_v28 = vld [vmem:[%s707_s1 + $0x30] sm:$0xff] }
  0x68   :  { %v177_v38 = vsel %vm158_vm7, %v510_v18, 0.0 }
  0x6e   :  { %v95_v34 = vpop.permute.xlu2 %94 }
  0x6f   :  { %vm161_vm10 = vcmp.ge.f32.partialorder %v505_v17, %v95_v34  ;;  %v338_v34 = vld [vmem:[%s708_s2 + $0x30] sm:$0xff] }
  0x70   :  { %v180_v44 = vsel %vm161_vm10, %v510_v18, 0.0 }
  0x74   :  { %v65_v19 = vpop.permute.xlu1 %64  ;;  %v55_v20 = vpop.permute.xlu0 %54 }
  0x75   :  { %vm155_vm0 = vcmp.ge.f32.partialorder %v505_v17, %v65_v19  ;;  %vm153_vm1 = vcmp.ge.f32.partialorder %v505_v17, %v55_v20  ;;  %v275_v19 = vld [vmem:[%s707_s1 + $0x38] sm:$0xff] }
  0x76   :  { %v172_v21 = vsel %vm153_vm1, %v510_v18, 0.0  ;;  %v174_v22 = vsel %vm155_vm0, %v510_v18, 0.0  ;;  %v110_v42 = vpop.permute.xlu2 %109  ;;  %vm364_vm0 = vcmask 7168  }
  0x77   :  { %236 = vadd.xlane.f32.xlu1 %v172_v21  ;;  %240 = vadd.xlane.f32.xlu0 %v174_v22  ;;  %vm164_vm13 = vcmp.ge.f32.partialorder %v505_v17, %v110_v42  ;;  %v271_v22 = vld [vmem:[%s707_s1 + $0x18] sm:$0xff] }
  0x78   :  { %v183_v47 = vsel %vm164_vm13, %v510_v18, 0.0 }
  0x7c   :  { %v70_v24 = vpop.permute.xlu1 %69  ;;  %v60_v25 = vpop.permute.xlu0 %59 }
  0x7d   :  { %vm154_vm3 = vcmp.ge.f32.partialorder %v505_v17, %v60_v25  ;;  %vm156_vm4 = vcmp.ge.f32.partialorder %v505_v17, %v70_v24 }
  0x7e   :  { %v173_v27 = vsel %vm154_vm3, %v510_v18, 0.0  ;;  %v175_v32 = vsel %vm156_vm4, %v510_v18, 0.0  ;;  %v125_v49 = vpop.permute.xlu2 %124 }
  0x7f   :  { %244 = vadd.xlane.f32.xlu1 %v176_v26  ;;  %238 = vadd.xlane.f32.xlu2 %v173_v27  ;;  %vm167_vm15 = vcmp.ge.f32.partialorder %v505_v17, %v125_v49  ;;  %v339_v26 = vld [vmem:[%s708_s2 + $0x38] sm:$0xff]  ;;  %v277_v49 = vld [vmem:[%s707_s1 + $0x48] sm:$0xff] }
  0x80   :  { %v186_v50 = vsel %vm167_vm15, %v510_v18, 0.0 }
  0x84   :  { %v90_v29 = vpop.permute.xlu1 %89  ;;  %v85_v30 = vpop.permute.xlu0 %84 }
  0x85   :  { %vm160_vm5 = vcmp.ge.f32.partialorder %v505_v17, %v90_v29  ;;  %vm159_vm6 = vcmp.ge.f32.partialorder %v505_v17, %v85_v30 }
  0x86   :  { %v179_v31 = vsel %vm160_vm5, %v510_v18, 0.0  ;;  %v178_v33 = vsel %vm159_vm6, %v510_v18, 0.0 }
  0x87   :  { %250 = vadd.xlane.f32.xlu1 %v179_v31  ;;  %242 = vadd.xlane.f32.xlu2 %v175_v32  ;;  %v335_v31 = vld [vmem:[%s708_s2 + $0x18] sm:$0xff] }
  0x88   :  { %248 = vadd.xlane.f32.xlu0 %v178_v33 }
  0x8c   :  { %v105_v35 = vpop.permute.xlu1 %104  ;;  %v100_v36 = vpop.permute.xlu0 %99 }
  0x8d   :  { %vm163_vm8 = vcmp.ge.f32.partialorder %v505_v17, %v105_v35  ;;  %vm162_vm9 = vcmp.ge.f32.partialorder %v505_v17, %v100_v36 }
  0x8e   :  { %v182_v37 = vsel %vm163_vm8, %v510_v18, 0.0  ;;  %v181_v39 = vsel %vm162_vm9, %v510_v18, 0.0 }
  0x8f   :  { %256 = vadd.xlane.f32.xlu1 %v182_v37  ;;  %246 = vadd.xlane.f32.xlu2 %v177_v38 }
  0x90   :  { %254 = vadd.xlane.f32.xlu0 %v181_v39 }
  0x94   :  { %v120_v40 = vpop.permute.xlu1 %119  ;;  %v115_v41 = vpop.permute.xlu0 %114 }
  0x95   :  { %vm166_vm11 = vcmp.ge.f32.partialorder %v505_v17, %v120_v40  ;;  %vm165_vm12 = vcmp.ge.f32.partialorder %v505_v17, %v115_v41  ;;  %v278_v40 = vld [vmem:[%s707_s1 + $0x50] sm:$0xff] }
  0x96   :  { %v185_v43 = vsel %vm166_vm11, %v510_v18, 0.0  ;;  %v184_v45 = vsel %vm165_vm12, %v510_v18, 0.0 }
  0x97   :  { %262 = vadd.xlane.f32.xlu1 %v185_v43  ;;  %252 = vadd.xlane.f32.xlu2 %v180_v44  ;;  %v273_v43 = vld [vmem:[%s707_s1 + $0x28] sm:$0xff] }
  0x98   :  { %260 = vadd.xlane.f32.xlu0 %v184_v45 }
  0x9c   :  { %v130_v46 = vpop.permute.xlu0 %129 }
  0x9d   :  { %vm168_vm14 = vcmp.ge.f32.partialorder %v505_v17, %v130_v46 }
  0x9e   :  { %v187_v48 = vsel %vm168_vm14, %v510_v18, 0.0 }
  0x9f   :  { %258 = vadd.xlane.f32.xlu2 %v183_v47  ;;  %v342_v47 = vld [vmem:[%s708_s2 + $0x50] sm:$0xff] }
  0xa0   :  { %266 = vadd.xlane.f32.xlu0 %v187_v48 }
  0xa7   :  { %264 = vadd.xlane.f32.xlu2 %v186_v50 }
  0xea   :  { %v237_v51 = vpop.xlane.xlu1 %236  ;;  %v241_v52 = vpop.xlane.xlu0 %240 }
  0xeb   :  { %391 = vlog2.f32 %v237_v51 }
  0xec   :  { %393 = vlog2.f32 %v241_v52  ;;  %v337_v52 = vld [vmem:[%s708_s2 + $0x28] sm:$0xff] }
  0xf1   :  { %v392_v53 = vpop.eup %391 }
  0xf2   :  { %v394_v55 = vpop.eup %393  ;;  %v285_v56 = vmul.f32 0.6931472, %v392_v53  ;;  %v245_v57 = vpop.xlane.xlu1 %244 }
  0xf3   :  { %v239_v58 = vpop.xlane.xlu2 %238  ;;  %395 = vlog2.f32 %v245_v57  ;;  %v289_v61 = vmul.f32 0.6931472, %v394_v55  ;;  %v341_v55 = vld [vmem:[%s708_s2 + $0x48] sm:$0xff] }
  0xf4   :  { %v316_v62 = vsub.f32 %v268_v54, %v285_v56  ;;  %397 = vlog2.f32 %v239_v58 }
  0xf5   :  { %v318_v0 = vsub.f32 %v270_v59, %v289_v61  ;;  %v281_v61 = vld [vmem:[%s707_s1 + $0x68] sm:$0xff] }
  0xf6   :  { %v348_v1 = vmul.f32 %v332_v60, %v316_v62 }
  0xf7   :  { %v350_v2 = vmul.f32 %v334_v63, %v318_v0  ;;  %v276_v0 = vld [vmem:[%s707_s1 + $0x40] sm:$0xff] }
  0xf8   :  { %365 = vst.msk [vmem:[%s709_s5] sm:$0xff] %vm364_vm0, %v348_v1 }
  0xf9   :  { %v396_v3 = vpop.eup %395  ;;  %367 = vst.msk [vmem:[%s709_s5 + $0x10] sm:$0xff] %vm364_vm0, %v350_v2 }
  0xfa   :  { %v398_v5 = vpop.eup %397  ;;  %v293_v6 = vmul.f32 0.6931472, %v396_v3  ;;  %v251_v8 = vpop.xlane.xlu1 %250  ;;  %v345_v3 = vld [vmem:[%s708_s2 + $0x68] sm:$0xff] }
  0xfb   :  { %v243_v9 = vpop.xlane.xlu2 %242  ;;  %v287_v11 = vmul.f32 0.6931472, %v398_v5  ;;  %399 = vlog2.f32 %v251_v8  ;;  %v249_v12 = vpop.xlane.xlu0 %248  ;;  %v280_v5 = vld [vmem:[%s707_s1 + $0x60] sm:$0xff] }
  0xfc   :  { %v320_v13 = vsub.f32 %v272_v4, %v293_v6  ;;  %401 = vlog2.f32 %v243_v9  ;;  %v340_v8 = vld [vmem:[%s708_s2 + $0x40] sm:$0xff] }
  0xfd   :  { %v317_v15 = vsub.f32 %v269_v7, %v287_v11  ;;  %403 = vlog2.f32 %v249_v12  ;;  %v344_v11 = vld [vmem:[%s708_s2 + $0x60] sm:$0xff] }
  0xfe   :  { %v352_v16 = vmul.f32 %v336_v10, %v320_v13 }
  0xff   :  { %v349_v17 = vmul.f32 %v333_v14, %v317_v15 }
 0x100   :  { %369 = vst.msk [vmem:[%s709_s5 + $0x20] sm:$0xff] %vm364_vm0, %v352_v16 }
 0x101   :  { %v400_v18 = vpop.eup %399  ;;  %366 = vst.msk [vmem:[%s709_s5 + $0x8] sm:$0xff] %vm364_vm0, %v349_v17  ;;  %v279_v17 = vld [vmem:[%s707_s1 + $0x58] sm:$0xff] }
 0x102   :  { %v402_v20 = vpop.eup %401  ;;  %v299_v21 = vmul.f32 0.6931472, %v400_v18  ;;  %v257_v23 = vpop.xlane.xlu1 %256 }
 0x103   :  { %v247_v24 = vpop.xlane.xlu2 %246  ;;  %v404_v25 = vpop.eup %403  ;;  %v291_v27 = vmul.f32 0.6931472, %v402_v20  ;;  %405 = vlog2.f32 %v257_v23  ;;  %v283_v20 = vld [vmem:[%s707_s1 + $0x78] sm:$0xff] }
 0x104   :  { %v255_v29 = vpop.xlane.xlu0 %254  ;;  %v323_v30 = vsub.f32 %v275_v19, %v299_v21  ;;  %v297_v32 = vmul.f32 0.6931472, %v404_v25  ;;  %407 = vlog2.f32 %v247_v24  ;;  %v347_v25 = vld [vmem:[%s708_s2 + $0x78] sm:$0xff] }
 0x105   :  { %v319_v33 = vsub.f32 %v271_v22, %v291_v27  ;;  %409 = vlog2.f32 %v255_v29  ;;  %v343_v22 = vld [vmem:[%s708_s2 + $0x58] sm:$0xff] }
 0x106   :  { %v355_v35 = vmul.f32 %v339_v26, %v323_v30  ;;  %v322_v36 = vsub.f32 %v274_v28, %v297_v32  ;;  %v282_v30 = vld [vmem:[%s707_s1 + $0x70] sm:$0xff] }
 0x107   :  { %v351_v37 = vmul.f32 %v335_v31, %v319_v33  ;;  %v346_v32 = vld [vmem:[%s708_s2 + $0x70] sm:$0xff] }
 0x108   :  { %372 = vst.msk [vmem:[%s709_s5 + $0x38] sm:$0xff] %vm364_vm0, %v355_v35  ;;  %v354_v38 = vmul.f32 %v338_v34, %v322_v36 }
 0x109   :  { %v406_v39 = vpop.eup %405  ;;  %368 = vst.msk [vmem:[%s709_s5 + $0x18] sm:$0xff] %vm364_vm0, %v351_v37 }
 0x10a   :  { %v408_v41 = vpop.eup %407  ;;  %371 = vst.msk [vmem:[%s709_s5 + $0x30] sm:$0xff] %vm364_vm0, %v354_v38  ;;  %v305_v42 = vmul.f32 0.6931472, %v406_v39  ;;  %v263_v44 = vpop.xlane.xlu1 %262 }
 0x10b   :  { %v253_v45 = vpop.xlane.xlu2 %252  ;;  %v410_v46 = vpop.eup %409  ;;  %v295_v48 = vmul.f32 0.6931472, %v408_v41  ;;  %411 = vlog2.f32 %v263_v44 }
 0x10c   :  { %v261_v50 = vpop.xlane.xlu0 %260  ;;  %v326_v51 = vsub.f32 %v278_v40, %v305_v42  ;;  %v303_v53 = vmul.f32 0.6931472, %v410_v46  ;;  %413 = vlog2.f32 %v253_v45 }
 0x10d   :  { %v321_v54 = vsub.f32 %v273_v43, %v295_v48  ;;  %415 = vlog2.f32 %v261_v50 }
 0x10e   :  { %v358_v56 = vmul.f32 %v342_v47, %v326_v51  ;;  %v325_v57 = vsub.f32 %v277_v49, %v303_v53 }
 0x10f   :  { %v353_v58 = vmul.f32 %v337_v52, %v321_v54 }
 0x110   :  { %375 = vst.msk [vmem:[%s709_s5 + $0x50] sm:$0xff] %vm364_vm0, %v358_v56  ;;  %v357_v59 = vmul.f32 %v341_v55, %v325_v57 }
 0x111   :  { %v412_v60 = vpop.eup %411  ;;  %370 = vst.msk [vmem:[%s709_s5 + $0x28] sm:$0xff] %vm364_vm0, %v353_v58 }
 0x112   :  { %v414_v62 = vpop.eup %413  ;;  %374 = vst.msk [vmem:[%s709_s5 + $0x48] sm:$0xff] %vm364_vm0, %v357_v59  ;;  %v311_v63 = vmul.f32 0.6931472, %v412_v60 }
 0x113   :  { %v259_v1 = vpop.xlane.xlu2 %258  ;;  %v416_v2 = vpop.eup %415  ;;  %v301_v4 = vmul.f32 0.6931472, %v414_v62 }
 0x114   :  { %417 = vlog2.f32 %v259_v1  ;;  %v267_v6 = vpop.xlane.xlu0 %266  ;;  %v329_v7 = vsub.f32 %v281_v61, %v311_v63  ;;  %v309_v9 = vmul.f32 0.6931472, %v416_v2 }
 0x115   :  { %419 = vlog2.f32 %v267_v6  ;;  %v324_v10 = vsub.f32 %v276_v0, %v301_v4 }
 0x116   :  { %v361_v12 = vmul.f32 %v345_v3, %v329_v7  ;;  %v328_v13 = vsub.f32 %v280_v5, %v309_v9 }
 0x117   :  { %v356_v14 = vmul.f32 %v340_v8, %v324_v10 }
 0x118   :  { %378 = vst.msk [vmem:[%s709_s5 + $0x68] sm:$0xff] %vm364_vm0, %v361_v12  ;;  %v360_v15 = vmul.f32 %v344_v11, %v328_v13 }
 0x119   :  { %373 = vst.msk [vmem:[%s709_s5 + $0x40] sm:$0xff] %vm364_vm0, %v356_v14 }
 0x11a   :  { %v418_v16 = vpop.eup %417  ;;  %377 = vst.msk [vmem:[%s709_s5 + $0x60] sm:$0xff] %vm364_vm0, %v360_v15 }
 0x11b   :  { %v420_v18 = vpop.eup %419  ;;  %v307_v19 = vmul.f32 0.6931472, %v418_v16  ;;  %v265_v21 = vpop.xlane.xlu2 %264 }
 0x11c   :  { %v315_v23 = vmul.f32 0.6931472, %v420_v18  ;;  %421 = vlog2.f32 %v265_v21 }
 0x11d   :  { %v327_v24 = vsub.f32 %v279_v17, %v307_v19 }
 0x11e   :  { %v331_v26 = vsub.f32 %v283_v20, %v315_v23 }
 0x11f   :  { %v359_v27 = vmul.f32 %v343_v22, %v327_v24 }
 0x120   :  { %v363_v28 = vmul.f32 %v347_v25, %v331_v26 }
 0x121   :  { %376 = vst.msk [vmem:[%s709_s5 + $0x58] sm:$0xff] %vm364_vm0, %v359_v27 }
 0x122   :  { %v422_v29 = vpop.eup %421  ;;  %380 = vst.msk [vmem:[%s709_s5 + $0x78] sm:$0xff] %vm364_vm0, %v363_v28 }
 0x123   :  { %v313_v31 = vmul.f32 0.6931472, %v422_v29 }
 0x125   :  { %v330_v33 = vsub.f32 %v282_v30, %v313_v31 }
 0x127   :  { %v362_v34 = vmul.f32 %v346_v32, %v330_v33 }
 0x129   :  { %379 = vst.msk [vmem:[%s709_s5 + $0x70] sm:$0xff] %vm364_vm0, %v362_v34 }

</bundles_post_ra>
